<compile_context>
chip_gen: v7x
topology: tpu7x:2x2x1
jax: 0.10.0
libtpu: 0.0.40
codegen_flags: <defaults>
</compile_context>

<pallas_src>
import functools

import jax
import jax.numpy as jnp
from jax.experimental import pallas as pl
from jax.experimental.pallas import tpu as pltpu


def _round_up(a: int, b: int) -> int:
    return (a + b - 1) // b * b


# --------------------------------------------------------------------------- #
# Kernels
# --------------------------------------------------------------------------- #
def _lora_kernel(three, x_ref, w_big_ref, b_big_ref, wb_ref, o_ref):
    """Two-matmul LoRA path: x @ [Wqkv^T|A_q|A_v] then block-structured B."""
    x = x_ref[...].astype(w_big_ref.dtype)            # in-kernel cast (hidden under MXU)

    # Fused matmul #1: qkv columns + both rank-r A activations, f32 accumulate.
    big = jnp.dot(x, w_big_ref[...], preferred_element_type=jnp.float32)
    big = big + b_big_ref[...]                        # f32 bias (0 on LoRA columns)

    qkv = big[:, :three]                              # (tm, 3*dim) f32
    lora_a = big[:, three:].astype(wb_ref.dtype)      # (tm, 2*r_pad), 128-lane dense

    # Fused matmul #2: scale already folded into the weights; the K dim-block
    # is zero so the result is directly the (tm, 3*dim) LoRA delta.
    lora = jnp.dot(lora_a, wb_ref[...], preferred_element_type=jnp.float32)

    # Single full-width, unmasked, lane-dense store.
    o_ref[...] = (qkv + lora).astype(o_ref.dtype)


def _merged_kernel(x_ref, w_ref, b_ref, o_ref):
    """Inference path: LoRA delta pre-merged into Wqkv -> one matmul."""
    x = x_ref[...].astype(w_ref.dtype)
    acc = jnp.dot(x, w_ref[...], preferred_element_type=jnp.float32) + b_ref[...]
    o_ref[...] = acc.astype(o_ref.dtype)


# --------------------------------------------------------------------------- #
# Weight packing (hoisted out of the per-call path; run once per weight set)
# --------------------------------------------------------------------------- #
def pack_lora_weights(w_qkv, b_qkv, w_a_q, w_b_q, w_a_v, w_b_v, *,
                      alpha=1, r=3, compute_dtype=jnp.bfloat16,
                      merge_lora=False):
    """PyTorch-Linear weights: w_qkv (3*dim, dim), w_a_* (r, dim), w_b_* (dim, r).

    Returns (w_big, b_big, wb_big) with wb_big=None on the merged path.
    Call once per weight set (model init) and reuse."""
    three, dim = w_qkv.shape
    assert three == 3 * dim
    assert w_a_q.shape == (r, dim) and w_a_v.shape == (r, dim)
    assert w_b_q.shape == (dim, r) and w_b_v.shape == (dim, r)
    scale = float(alpha) / float(r)
    cdt = compute_dtype
    f32 = jnp.float32

    if merge_lora:
        # Fold the rank-r delta directly into the Q / V columns of Wqkv^T.
        w = w_qkv.T.astype(f32)                                     # (dim, 3*dim)
        w = w.at[:, :dim].add(scale * (w_a_q.T.astype(f32) @ w_b_q.T.astype(f32)))
        w = w.at[:, 2 * dim:].add(scale * (w_a_v.T.astype(f32) @ w_b_v.T.astype(f32)))
        w_big = w.astype(cdt)
        b_big = b_qkv.astype(f32)[None, :]                          # (1, 3*dim)
        return w_big, b_big, None

    # LoRA rank padded so the fused A activations are one full 128-lane tile.
    r_pad = _round_up(max(r, 1), 64)                  # 2*r_pad == 128 for r <= 64
    k_big = three + 2 * r_pad

    w_big = jnp.zeros((dim, k_big), dtype=cdt)
    w_big = w_big.at[:, :three].set(w_qkv.T.astype(cdt))
    w_big = w_big.at[:, three:three + r].set(w_a_q.T.astype(cdt))
    w_big = w_big.at[:, three + r_pad:three + r_pad + r].set(w_a_v.T.astype(cdt))

    b_big = jnp.zeros((1, k_big), dtype=f32)
    b_big = b_big.at[:, :three].set(b_qkv.astype(f32)[None, :])

    # Fold `scale` into the B weights (free vs. per-tile VPU mults).
    wb_big = jnp.zeros((2 * r_pad, three), dtype=cdt)
    wb_big = wb_big.at[:r, :dim].set((scale * w_b_q.T).astype(cdt))
    wb_big = wb_big.at[r_pad:r_pad + r, 2 * dim:].set((scale * w_b_v.T).astype(cdt))
    return w_big, b_big, wb_big


# --------------------------------------------------------------------------- #
# Tile selection
# --------------------------------------------------------------------------- #
def _pick_tm(M, tm_max):
    """Largest multiple-of-16 tile <= tm_max minimizing zero padding; prefer
    >=2 grid steps (v7x 2-TC sharding) when it costs no extra padding."""
    tm_max = max(16, min(_round_up(tm_max, 16), _round_up(M, 16)))
    lo = max(16, (tm_max // 2) // 16 * 16)
    best_t = tm_max
    best_key = (_round_up(M, best_t) - M, -min(_round_up(M, best_t) // best_t, 2))
    for t in range(tm_max, lo - 1, -16):
        pad = _round_up(M, t) - M
        steps = _round_up(M, t) // t
        key = (pad, -min(steps, 2))
        if key < best_key:
            best_t, best_key = t, key
    return best_t


# --------------------------------------------------------------------------- #
# Forward
# --------------------------------------------------------------------------- #
def lora_forward_packed(x, packed, *, tm=256, out_dtype=None):
    """x: (B, N, dim); packed = pack_lora_weights(...). Returns (B, N, 3*dim)."""
    w_big, b_big, wb_big = packed
    B, N, dim = x.shape
    assert w_big.shape[0] == dim
    M = B * N
    k_big = w_big.shape[1]
    three = k_big if wb_big is None else wb_big.shape[1]
    out_dtype = x.dtype if out_dtype is None else out_dtype

    tm = _pick_tm(M, tm)
    M_pad = _round_up(M, tm)
    grid = (M_pad // tm,)

    x2 = x.reshape(M, dim)                            # native dtype; cast in-kernel
    if M_pad != M:
        x2 = jnp.pad(x2, ((0, M_pad - M), (0, 0)))

    # ---- VMEM budget (conservative: counts residents as double-buffered,
    #      includes the in-kernel f32 intermediates) ---------------------------
    w_itm = jnp.dtype(w_big.dtype).itemsize
    x_itm = jnp.dtype(x.dtype).itemsize
    o_itm = jnp.dtype(out_dtype).itemsize
    wb_bytes = 0 if wb_big is None else wb_big.size * w_itm
    vmem_est = (2 * tm * dim * x_itm                              # x tiles (2-buf)
                + 2 * tm * three * o_itm                          # out tiles (2-buf)
                + 2 * (w_big.size * w_itm + b_big.size * 4 + wb_bytes)  # residents
                + tm * k_big * 4 + 2 * tm * three * 4             # f32 big + qkv/lora temps
                + tm * dim * w_itm                                # casted x
                + (0 if wb_big is None else tm * (k_big - three) * w_itm))  # lora_a
    cp_kwargs = dict(dimension_semantics=("parallel",))           # megacore / v7x 2-TC
    if vmem_est > 16 * 1024 * 1024:
        try:
            phys = pltpu.get_tpu_info().vmem_capacity_bytes
        except Exception:
            phys = 64 * 1024 * 1024                               # v7x per-core (smallest)
        cp_kwargs["vmem_limit_bytes"] = max(
            32 * 1024 * 1024,
            min(int(vmem_est * 1.25), phys - 8 * 1024 * 1024))

    x_spec = pl.BlockSpec((tm, dim), lambda i: (i, 0))
    o_spec = pl.BlockSpec((tm, three), lambda i: (i, 0))

    def resident(shape, single_buffer):
        idx = lambda i: (0,) * len(shape)
        if single_buffer:
            # Constant index_map -> DMA'd once; single-buffer to halve its VMEM.
            return pl.BlockSpec(shape, idx, pipeline_mode=pl.Buffered(1))
        return pl.BlockSpec(shape, idx)

    if wb_big is None:
        kernel = _merged_kernel
        args = (x2, w_big, b_big)
        w_shapes = [w_big.shape, b_big.shape]
    else:
        kernel = functools.partial(_lora_kernel, three)
        args = (x2, w_big, b_big, wb_big)
        w_shapes = [w_big.shape, b_big.shape, wb_big.shape]

    def run(single_buffer_weights):
        in_specs = [x_spec] + [resident(s, single_buffer_weights) for s in w_shapes]
        return pl.pallas_call(
            kernel,
            out_shape=jax.ShapeDtypeStruct((M_pad, three), out_dtype),
            grid_spec=pltpu.PrefetchScalarGridSpec(
                num_scalar_prefetch=0,
                grid=grid,
                in_specs=in_specs,
                out_specs=o_spec,
            ),
            compiler_params=pltpu.CompilerParams(**cp_kwargs),
        )(*args)

    try:
        out = run(True)        # preferred: single-buffered resident weights
    except Exception:
        out = run(False)       # fallback: default double-buffering (compile-safe)

    if M_pad != M:
        out = out[:M]
    return out.reshape(B, N, three)


def lora_forward(x, w_qkv, b_qkv, w_a_q, w_b_q, w_a_v, w_b_v, *,
                 alpha=1, r=3, tm=256, compute_dtype=jnp.bfloat16,
                 out_dtype=None, merge_lora=False):
    """Convenience wrapper. For production, call pack_lora_weights() once and
    reuse the packed weights with lora_forward_packed()."""
    packed = pack_lora_weights(w_qkv, b_qkv, w_a_q, w_b_q, w_a_v, w_b_v,
                               alpha=alpha, r=r, compute_dtype=compute_dtype,
                               merge_lora=merge_lora)
    return lora_forward_packed(x, packed, tm=tm, out_dtype=out_dtype)


# --------------------------------------------------------------------------- #
# Pure-JAX reference (mirror of the PyTorch forward)
# --------------------------------------------------------------------------- #
def lora_reference(x, w_qkv, b_qkv, w_a_q, w_b_q, w_a_v, w_b_v, *, alpha=1, r=3):
    dim = x.shape[-1]
    scale = float(alpha) / float(r)
    qkv = jnp.einsum('bnd,od->bno', x, w_qkv) + b_qkv
    new_q = scale * jnp.einsum('bnr,dr->bnd', jnp.einsum('bnd,rd->bnr', x, w_a_q), w_b_q)
    new_v = scale * jnp.einsum('bnr,dr->bnd', jnp.einsum('bnd,rd->bnr', x, w_a_v), w_b_v)
    qkv = qkv.at[:, :, :dim].add(new_q)
    qkv = qkv.at[:, :, -dim:].add(new_v)
    return qkv


if __name__ == "__main__":
    B, N, dim, r, alpha = 2, 8, 32, 3, 1

    key = jax.random.PRNGKey(0)
    ks = jax.random.split(key, 7)
    x = jax.random.normal(ks[0], (B, N, dim), dtype=jnp.float32)
    w_qkv = jax.random.normal(ks[1], (3 * dim, dim), dtype=jnp.float32) * 0.05
    b_qkv = jax.random.normal(ks[2], (3 * dim,), dtype=jnp.float32) * 0.05
    w_a_q = jax.random.normal(ks[3], (r, dim), dtype=jnp.float32) * 0.05
    w_b_q = jax.random.normal(ks[4], (dim, r), dtype=jnp.float32) * 0.05
    w_a_v = jax.random.normal(ks[5], (r, dim), dtype=jnp.float32) * 0.05
    w_b_v = jax.random.normal(ks[6], (dim, r), dtype=jnp.float32) * 0.05

    ref = lora_reference(x, w_qkv, b_qkv, w_a_q, w_b_q, w_a_v, w_b_v,
                         alpha=alpha, r=r)

    # 1) Exact-dtype path (f32 on MXU, two-matmul LoRA) — tight correctness check.
    packed_f32 = pack_lora_weights(w_qkv, b_qkv, w_a_q, w_b_q, w_a_v, w_b_v,
                                   alpha=alpha, r=r, compute_dtype=jnp.float32)
    out_f32 = jax.block_until_ready(lora_forward_packed(x, packed_f32))
    assert out_f32.shape == (B, N, 3 * dim)
    assert jnp.allclose(out_f32, ref, atol=1e-4, rtol=1e-4), "f32 kernel mismatch"

    # 2) Production path: bf16 weights/compute, f32 accumulation, bf16 output.
    #    Weights packed once, reused across calls.
    packed_bf16 = pack_lora_weights(w_qkv, b_qkv, w_a_q, w_b_q, w_a_v, w_b_v,
                                    alpha=alpha, r=r, compute_dtype=jnp.bfloat16)
    out_bf16 = jax.block_until_ready(
        lora_forward_packed(x, packed_bf16, out_dtype=jnp.bfloat16))
    assert out_bf16.shape == (B, N, 3 * dim)
    assert jnp.allclose(out_bf16.astype(jnp.float32), ref,
                        atol=3e-2, rtol=3e-2), "bf16 kernel mismatch"

    # 3) Inference path: LoRA delta merged into Wqkv -> single-matmul kernel.
    packed_merged = pack_lora_weights(w_qkv, b_qkv, w_a_q, w_b_q, w_a_v, w_b_v,
                                      alpha=alpha, r=r, compute_dtype=jnp.bfloat16,
                                      merge_lora=True)
    out_merged = jax.block_until_ready(
        lora_forward_packed(x, packed_merged, out_dtype=jnp.bfloat16))
    assert out_merged.shape == (B, N, 3 * dim)
    assert jnp.allclose(out_merged.astype(jnp.float32), ref,
                        atol=3e-2, rtol=3e-2), "merged kernel mismatch"

    print("KERNEL_OK")
</pallas_src>

<mosaic_0001>
module attributes {stable_mosaic.version = 11 : i64} {
  func.func @_lora_kernel(%arg0: i32, %arg1: memref<16x32xf32, #tpu.memory_space<vmem>>, %arg2: memref<32x224xf32, #tpu.memory_space<vmem>>, %arg3: memref<1x224xf32, #tpu.memory_space<vmem>>, %arg4: memref<128x96xf32, #tpu.memory_space<vmem>>, %arg5: memref<16x96xf32, #tpu.memory_space<vmem>>) attributes {dimension_semantics = [#tpu.dimension_semantics<parallel>], iteration_bounds = array<i64: 1>, scalar_prefetch = 0 : i64, scratch_operands = 0 : i64, tpu.core_type = #tpu.core_type<tc>, window_params = [{transform_indices = @transform_0, window_bounds = array<i64: 16, 32>}, {pipeline_mode = #tpu.pipeline_mode<synchronous>, transform_indices = @transform_1, window_bounds = array<i64: 32, 224>}, {pipeline_mode = #tpu.pipeline_mode<synchronous>, transform_indices = @transform_2, window_bounds = array<i64: 1, 224>}, {pipeline_mode = #tpu.pipeline_mode<synchronous>, transform_indices = @transform_3, window_bounds = array<i64: 128, 96>}, {transform_indices = @transform_4, window_bounds = array<i64: 16, 96>}]} {
    %c0 = arith.constant 0 : index
    %c0_0 = arith.constant 0 : index
    %0 = vector.load %arg1[%c0, %c0_0] : memref<16x32xf32, #tpu.memory_space<vmem>>, vector<16x32xf32>
    %c0_1 = arith.constant 0 : index
    %c0_2 = arith.constant 0 : index
    %1 = vector.load %arg2[%c0_1, %c0_2] : memref<32x224xf32, #tpu.memory_space<vmem>>, vector<32x224xf32>
    %cst = arith.constant dense<0.000000e+00> : vector<16x224xf32>
    %2 = tpu.matmul %0, %1, %cst {dimension_numbers = #tpu.dot_dimension_numbers<[1], [0], [0], [1], [0, 0, 1, 1], [], []>} : vector<16x32xf32>, vector<32x224xf32>, vector<16x224xf32> -> vector<16x224xf32>
    %c0_3 = arith.constant 0 : index
    %c0_4 = arith.constant 0 : index
    %3 = vector.load %arg3[%c0_3, %c0_4] : memref<1x224xf32, #tpu.memory_space<vmem>>, vector<1x224xf32>
    %4 = vector.broadcast %3 : vector<1x224xf32> to vector<16x224xf32>
    %5 = arith.addf %2, %4 : vector<16x224xf32>
    %6 = vector.extract_strided_slice %5 {offsets = [0, 0], sizes = [16, 96], strides = [1, 1]} : vector<16x224xf32> to vector<16x96xf32>
    %7 = vector.extract_strided_slice %5 {offsets = [0, 96], sizes = [16, 128], strides = [1, 1]} : vector<16x224xf32> to vector<16x128xf32>
    %c0_5 = arith.constant 0 : index
    %c0_6 = arith.constant 0 : index
    %8 = vector.load %arg4[%c0_5, %c0_6] : memref<128x96xf32, #tpu.memory_space<vmem>>, vector<128x96xf32>
    %cst_7 = arith.constant dense<0.000000e+00> : vector<16x96xf32>
    %9 = tpu.matmul %7, %8, %cst_7 {dimension_numbers = #tpu.dot_dimension_numbers<[1], [0], [0], [1], [0, 0, 1, 1], [], []>} : vector<16x128xf32>, vector<128x96xf32>, vector<16x96xf32> -> vector<16x96xf32>
    %10 = arith.addf %6, %9 : vector<16x96xf32>
    %c0_8 = arith.constant 0 : index
    %c0_9 = arith.constant 0 : index
    %11 = vector.load %arg5[%c0_8, %c0_9] : memref<16x96xf32, #tpu.memory_space<vmem>>, vector<16x96xf32>
    tpu.vector_store %arg5[%c0_8, %c0_9], %10 {strides = array<i32>} : memref<16x96xf32, #tpu.memory_space<vmem>>, vector<16x96xf32>,
    return
  }
  func.func @transform_0(%arg0: i32) -> (i32, i32) {
    %c0_i32 = arith.constant 0 : i32
    %c0_i32_0 = arith.constant 0 : i32
    return %arg0, %c0_i32 : i32, i32
  }
  func.func @transform_1(%arg0: i32) -> (i32, i32) {
    %c0_i32 = arith.constant 0 : i32
    %c0_i32_0 = arith.constant 0 : i32
    %c0_i32_1 = arith.constant 0 : i32
    return %c0_i32, %c0_i32_0 : i32, i32
  }
  func.func @transform_2(%arg0: i32) -> (i32, i32) {
    %c0_i32 = arith.constant 0 : i32
    %c0_i32_0 = arith.constant 0 : i32
    %c0_i32_1 = arith.constant 0 : i32
    return %c0_i32, %c0_i32_0 : i32, i32
  }
  func.func @transform_3(%arg0: i32) -> (i32, i32) {
    %c0_i32 = arith.constant 0 : i32
    %c0_i32_0 = arith.constant 0 : i32
    %c0_i32_1 = arith.constant 0 : i32
    return %c0_i32, %c0_i32_0 : i32, i32
  }
  func.func @transform_4(%arg0: i32) -> (i32, i32) {
    %c0_i32 = arith.constant 0 : i32
    %c0_i32_0 = arith.constant 0 : i32
    return %arg0, %c0_i32 : i32, i32
  }
}

module attributes {stable_mosaic.version = 11 : i64} {
  func.func @_lora_kernel(%arg0: i32, %arg1: memref<16x32xf32, #tpu.memory_space<vmem>>, %arg2: memref<32x224xf32, #tpu.memory_space<vmem>>, %arg3: memref<1x224xf32, #tpu.memory_space<vmem>>, %arg4: memref<128x96xf32, #tpu.memory_space<vmem>>, %arg5: memref<16x96xf32, #tpu.memory_space<vmem>>) attributes {dimension_semantics = [#tpu.dimension_semantics<parallel>], iteration_bounds = array<i64: 1>, scalar_prefetch = 0 : i64, scratch_operands = 0 : i64, tpu.core_type = #tpu.core_type<tc>, window_params = [{transform_indices = @transform_0, window_bounds = array<i64: 16, 32>}, {pipeline_mode = #tpu.pipeline_mode<synchronous>, transform_indices = @transform_1, window_bounds = array<i64: 32, 224>}, {pipeline_mode = #tpu.pipeline_mode<synchronous>, transform_indices = @transform_2, window_bounds = array<i64: 1, 224>}, {pipeline_mode = #tpu.pipeline_mode<synchronous>, transform_indices = @transform_3, window_bounds = array<i64: 128, 96>}, {transform_indices = @transform_4, window_bounds = array<i64: 16, 96>}]} {
    %c0 = arith.constant 0 : index
    %c0_0 = arith.constant 0 : index
    %0 = vector.load %arg1[%c0, %c0_0] : memref<16x32xf32, #tpu.memory_space<vmem>>, vector<16x32xf32>
    %c0_1 = arith.constant 0 : index
    %c0_2 = arith.constant 0 : index
    %1 = vector.load %arg2[%c0_1, %c0_2] : memref<32x224xf32, #tpu.memory_space<vmem>>, vector<32x224xf32>
    %cst = arith.constant dense<0.000000e+00> : vector<16x224xf32>
    %2 = tpu.matmul %0, %1, %cst {dimension_numbers = #tpu.dot_dimension_numbers<[1], [0], [0], [1], [0, 0, 1, 1], [], []>} : vector<16x32xf32>, vector<32x224xf32>, vector<16x224xf32> -> vector<16x224xf32>
    %c0_3 = arith.constant 0 : index
    %c0_4 = arith.constant 0 : index
    %3 = vector.load %arg3[%c0_3, %c0_4] : memref<1x224xf32, #tpu.memory_space<vmem>>, vector<1x224xf32>
    %4 = vector.broadcast %3 : vector<1x224xf32> to vector<16x224xf32>
    %5 = arith.addf %2, %4 : vector<16x224xf32>
    %6 = vector.extract_strided_slice %5 {offsets = [0, 0], sizes = [16, 96], strides = [1, 1]} : vector<16x224xf32> to vector<16x96xf32>
    %7 = vector.extract_strided_slice %5 {offsets = [0, 96], sizes = [16, 128], strides = [1, 1]} : vector<16x224xf32> to vector<16x128xf32>
    %c0_5 = arith.constant 0 : index
    %c0_6 = arith.constant 0 : index
    %8 = vector.load %arg4[%c0_5, %c0_6] : memref<128x96xf32, #tpu.memory_space<vmem>>, vector<128x96xf32>
    %cst_7 = arith.constant dense<0.000000e+00> : vector<16x96xf32>
    %9 = tpu.matmul %7, %8, %cst_7 {dimension_numbers = #tpu.dot_dimension_numbers<[1], [0], [0], [1], [0, 0, 1, 1], [], []>} : vector<16x128xf32>, vector<128x96xf32>, vector<16x96xf32> -> vector<16x96xf32>
    %10 = arith.addf %6, %9 : vector<16x96xf32>
    %c0_8 = arith.constant 0 : index
    %c0_9 = arith.constant 0 : index
    %11 = vector.load %arg5[%c0_8, %c0_9] : memref<16x96xf32, #tpu.memory_space<vmem>>, vector<16x96xf32>
    tpu.vector_store %arg5[%c0_8, %c0_9], %10 {strides = array<i32>} : memref<16x96xf32, #tpu.memory_space<vmem>>, vector<16x96xf32>,
    return
  }
  func.func @transform_0(%arg0: i32) -> (i32, i32) {
    %c0_i32 = arith.constant 0 : i32
    %c0_i32_0 = arith.constant 0 : i32
    return %arg0, %c0_i32 : i32, i32
  }
  func.func @transform_1(%arg0: i32) -> (i32, i32) {
    %c0_i32 = arith.constant 0 : i32
    %c0_i32_0 = arith.constant 0 : i32
    %c0_i32_1 = arith.constant 0 : i32
    return %c0_i32, %c0_i32_0 : i32, i32
  }
  func.func @transform_2(%arg0: i32) -> (i32, i32) {
    %c0_i32 = arith.constant 0 : i32
    %c0_i32_0 = arith.constant 0 : i32
    %c0_i32_1 = arith.constant 0 : i32
    return %c0_i32, %c0_i32_0 : i32, i32
  }
  func.func @transform_3(%arg0: i32) -> (i32, i32) {
    %c0_i32 = arith.constant 0 : i32
    %c0_i32_0 = arith.constant 0 : i32
    %c0_i32_1 = arith.constant 0 : i32
    return %c0_i32, %c0_i32_0 : i32, i32
  }
  func.func @transform_4(%arg0: i32) -> (i32, i32) {
    %c0_i32 = arith.constant 0 : i32
    %c0_i32_0 = arith.constant 0 : i32
    return %arg0, %c0_i32 : i32, i32
  }
}

</mosaic_0001>

<bundles_post_ra>
// kernel: tpu_custom_call.1
= control target key start
LH: loop header
LB: loop body
LE: loop exit
PB: predicated region body
PF: predicated region fallthrough
CT: control target
= control target key end

     0   :  { %v386_v7 = vmov 0.0   ;;  %s513_s0 = inlined_call_operand.vmem [shape: f32[16,32], index: 0, kind: input, shape index: {}]   ;;  %s514_s1 = inlined_call_operand.vmem [shape: f32[32,224], index: 1, kind: input, shape index: {}]   ;;  %s515_s2 = inlined_call_operand.vmem [shape: f32[1,224], index: 2, kind: input, shape index: {}]   ;;  %s516_s3 = inlined_call_operand.vmem [shape: f32[128,96], index: 3, kind: input, shape index: {}]   ;;  %s517_s4 = inlined_call_operand.hbm [shape: f32[16,96], index: 4, kind: output, shape index: {}]  }
   0x1   :  { %v21_v0 = vld [vmem:[%s514_s1 + $0x8] sm:$0xff]  ;;  %v23_v1 = vld [vmem:[%s514_s1 + $0x18] sm:$0xff]  ;;  %v20_v2 = vld [vmem:[%s514_s1] sm:$0xff]  ;;  %111 = vmatprep.mubr.f32.mxu0 %v386_v7 }
   0x2   :  { %v307_v3 = vpack.c.bf16 %v23_v1, %v21_v0  ;;  %v22_v4 = vld [vmem:[%s514_s1 + $0x10] sm:$0xff]  ;;  %v25_v5 = vld [vmem:[%s514_s1 + $0x28] sm:$0xff]  ;;  %v27_v6 = vld [vmem:[%s514_s1 + $0x38] sm:$0xff] }
   0x3   :  { %v309_v8 = vpack.c.bf16 %v22_v4, %v20_v2  ;;  %v311_v9 = vpack.c.bf16 %v27_v6, %v25_v5  ;;  %v24_v10 = vld [vmem:[%s514_s1 + $0x20] sm:$0xff]  ;;  %v26_v11 = vld [vmem:[%s514_s1 + $0x30] sm:$0xff] }
   0x4   :  { %308 = vmatprep.subr.bf16.mxu0 %v307_v3 }
   0x5   :  { %9 = vsyncpa [#allocation3], 0  ;;  %310 = vmatpush1.bf16.msra.mxu0 %v309_v8  ;;  %v313_v12 = vpack.c.bf16 %v26_v11, %v24_v10  ;;  %v18_v13 = vld [vmem:[%s513_s0] sm:$0xff]  ;;  %vm40_vm0 = vcmask 261120   ;;  %v19_v14 = vld [vmem:[%s513_s0 + $0x8] sm:$0xff]  ;;  %v30_v36 = vlaneseq  ;;  %vm233_vm1 = vcmask 785408  }
   0x6   :  { %312 = vmatprep.subr.bf16.mxu0 %v311_v9  ;;  %v124_v15 = vld [vmem:[%s516_s3] sm:$0xff]  ;;  %v125_v16 = vld [vmem:[%s516_s3 + $0x8] sm:$0xff]  ;;  %v126_v17 = vld [vmem:[%s516_s3 + $0x10] sm:$0xff] }
   0x7   :  { %v315_v18 = vpack.c.bf16 %v125_v16, %v124_v15  ;;  %v127_v19 = vld [vmem:[%s516_s3 + $0x18] sm:$0xff]  ;;  %v128_v21 = vld [vmem:[%s516_s3 + $0x20] sm:$0xff]  ;;  %v129_v22 = vld [vmem:[%s516_s3 + $0x28] sm:$0xff]  ;;  %v31_v37 = vshrl.u32 %v30_v36, 7 }
   0x8   :  { %v319_v20 = vpack.c.bf16 %v127_v19, %v126_v17  ;;  %v323_v23 = vpack.c.bf16 %v129_v22, %v128_v21  ;;  %v130_v24 = vld [vmem:[%s516_s3 + $0x30] sm:$0xff]  ;;  %v131_v25 = vld [vmem:[%s516_s3 + $0x38] sm:$0xff]  ;;  %v132_v27 = vld [vmem:[%s516_s3 + $0x40] sm:$0xff] }
   0x9   :  { %314 = vmatpush1.bf16.msra.mxu0 %v313_v12  ;;  %316 = vmatprep.subr.bf16.mxu1 %v315_v18  ;;  %v327_v26 = vpack.c.bf16 %v131_v25, %v130_v24  ;;  %v133_v28 = vld [vmem:[%s516_s3 + $0x48] sm:$0xff]  ;;  %v134_v30 = vld [vmem:[%s516_s3 + $0x50] sm:$0xff]  ;;  %v135_v31 = vld [vmem:[%s516_s3 + $0x58] sm:$0xff]  ;;  %v32_v38 = vsub.s32 0, %v31_v37  ;;  %v36_v42 = vsub.s32 1, %v31_v37 }
   0xa   :  { %318 = vmatpush3.bf16.msra.mxu1 %v315_v18  ;;  %v331_v29 = vpack.c.bf16 %v133_v28, %v132_v27  ;;  %v335_v32 = vpack.c.bf16 %v135_v31, %v134_v30  ;;  %v136_v33 = vld [vmem:[%s516_s3 + $0x60] sm:$0xff]  ;;  %v137_v34 = vld [vmem:[%s516_s3 + $0x68] sm:$0xff]  ;;  %v138_v39 = vld [vmem:[%s516_s3 + $0x70] sm:$0xff] }
   0xb   :  { %320 = vmatprep.subr.bf16.mxu1 %v319_v20  ;;  %v339_v35 = vpack.c.bf16 %v137_v34, %v136_v33  ;;  %v139_v40 = vld [vmem:[%s516_s3 + $0x78] sm:$0xff]  ;;  %v28_v41 = vld [vmem:[%s515_s2] sm:$0x3]  ;;  %s387_s3 = smov 32   ;;  %s388_s2 = smov [#allocation2]  }
   0xc   :  { %252 = vmatmul.mubr.msk.f32.vlgmr.msra.gmra.mrb[0].mxu0 %vm40_vm0, %v18_v13  ;;  %v343_v43 = vpack.c.bf16 %v139_v40, %v138_v39  ;;  %v33_v44 = vrot.slane %v28_v41, %v32_v38  ;;  %v37_v45 = vrot.slane %v28_v41, %v36_v42  ;;  %s241_s14 = sshll.u32 %s388_s2, 4  ;;  %s242_s14 = int_to_ptr.vmem [resolvable:$true] %s241_s14 }
   0xd   :  { %117 = vmatprep.mubr.f32.mxu0 %v386_v7  ;;  %s362_s15 = scalar_lea.vmem %s242_s14, 256  ;;  %p367_p1 = scmp.lt.s32.totalorder %s242_s14, %s242_s14 }
   0xe   :  { %322 = vmatpush3.bf16.msra.mxu1 %v319_v20  ;;  %p363_p0 = scmp.ne.s32.totalorder %s242_s14, %s362_s15  ;;  %p368_p2 = scmp.lt.s32.totalorder %s362_s15, %s362_s15 }
   0xf   :  { %324 = vmatprep.subr.bf16.mxu1 %v323_v23 }
  0x10   :  { %253 = vmatmul.mubr.msk.f32.gmra.mrb[2].mxu0 %vm40_vm0, %v19_v14  ;;  %p369_p3 = por %p368_p2, %p367_p1 }
  0x12   :  { %326 = vmatpush3.bf16.msra.mxu1 %v323_v23  ;;  %p370_p4 = pnand %p369_p3, %p363_p0 }
  0x13   :  { %328 = vmatprep.subr.bf16.mxu1 %v327_v26 }
  0x16   :  { %330 = vmatpush3.bf16.msra.mxu1 %v327_v26 }
  0x17   :  { %332 = vmatprep.subr.bf16.mxu1 %v331_v29 }
  0x1a   :  { %334 = vmatpush3.bf16.msra.mxu1 %v331_v29 }
  0x1b   :  { %336 = vmatprep.subr.bf16.mxu1 %v335_v32 }
  0x1e   :  { %338 = vmatpush3.bf16.msra.mxu1 %v335_v32 }
  0x1f   :  { %340 = vmatprep.subr.bf16.mxu1 %v339_v35 }
  0x22   :  { %342 = vmatpush3.bf16.msra.mxu1 %v339_v35 }
  0x23   :  { %344 = vmatprep.subr.bf16.mxu1 %v343_v43 }
  0x26   :  { %346 = vmatpush3.bf16.msra.mxu1 %v343_v43 }
  0xdf   :  { %v113_v46 = vpop.f32.mrb[0].mxu0 }
  0xe0   :  { %v114_v47 = vadd.f32 %v113_v46, %v33_v44  ;;  %v115_v48 = vpop.f32.mrb[1].mxu0 }
  0xe1   :  { %v116_v49 = vadd.f32 %v115_v48, %v37_v45 }
  0xe3   :  { %v119_v50 = vpop.f32.mrb[2].mxu0  ;;  %v352_v51 = vpack.i.bf16 %v116_v49, %v114_v47 }
  0xe4   :  { %v120_v52 = vadd.f32 %v119_v50, %v33_v44  ;;  %v121_v53 = vpop.f32.mrb[3].mxu0 }
  0xe5   :  { %v122_v54 = vadd.f32 %v121_v53, %v37_v45  ;;  %353 = vrot.lane.b32.xlu0 %v352_v51, %s387_s3 }
  0xe7   :  { %v357_v55 = vpack.i.bf16 %v122_v54, %v120_v52 }
  0xe9   :  { %358 = vrot.lane.b32.xlu0 %v357_v55, %s387_s3 }
 0x157   :  { %v354_v56 = vpop.permute.xlu0 %353 }
 0x158   :  { %v356_v57 = vunpack.i.h.bf16 %v354_v56  ;;  %v355_v58 = vunpack.i.l.bf16 %v354_v56 }
 0x15a   :  { %v152_v59 = vsel %vm40_vm0, %v355_v58, %v356_v57 }
 0x15b   :  { %v359_v60 = vpop.permute.xlu0 %358  ;;  %304 = vmatprep.mubr.f32.mxu1 %v152_v59 }
 0x15c   :  { %v361_v61 = vunpack.i.h.bf16 %v359_v60  ;;  %v360_v62 = vunpack.i.l.bf16 %v359_v60 }
 0x15e   :  { %v153_v63 = vsel %vm40_vm0, %v360_v62, %v361_v61 }
 0x15f   :  { %305 = vmatmul.mubr.f32.vlgmr.msra.gmra.mrb[0].mxu1 %v153_v63 }
 0x232   :  { %v306_v0 = vpop.f32.mrb[0].mxu1 }
 0x233   :  { %v232_v1 = vadd.f32 %v306_v0, %v120_v52  ;;  %v222_v2 = vpop.f32.mrb[1].mxu1 }
 0x234   :  { %v231_v3 = vadd.f32 %v222_v2, %v114_v47 }
 0x235   :  { %235 = vst.msk [vmem:[#allocation2 + $0x8] sm:$0xff] %vm233_vm1, %v232_v1 }
 0x236   :  { %234 = vst.msk [vmem:[#allocation2] sm:$0xff] %vm233_vm1, %v231_v3 }
 0x237   :  { %373 = shalt.err (!%p370_p4)
}
 0x238   :  { %s374_s17 = scalar_lea.hbm %s517_s4, 256 }
 0x239   :  { %p375_p5 = scmp.ne.s32.totalorder %s517_s4, %s374_s17  ;;  %p378_p6 = scmp.lt.u32.totalorder %s374_s17, %s517_s4 }
 0x23b   :  { %p380_p7 = pnand %p378_p6, %p375_p5 }
 0x23d   :  { %383 = shalt.err (!%p380_p7)
}
 0x23e   :  { %s389_s22 = smov 128   ;;  %s390_s23 = smov 8  }
 0x23f   :  { %247 = dma.vmem_to_hbm [thread:$0]  %s242_s14, 256, %s517_s4, [#allocation3], %s389_s22, %s389_s22, %s390_s23  }
 0x240   :  { %384 = dma.done.wait [#allocation3], 256  }
 0x241   :  { %385 = vsyncadd [#allocation3], 4294967040 }
 0x242   :  { %251 = vsyncpa [#allocation3], 1 }

// kernel: tpu_custom_call.1
= control target key start
LH: loop header
LB: loop body
LE: loop exit
PB: predicated region body
PF: predicated region fallthrough
CT: control target
= control target key end

     0   :  { %v386_v7 = vmov 0.0   ;;  %s513_s0 = inlined_call_operand.vmem [shape: f32[16,32], index: 0, kind: input, shape index: {}]   ;;  %s514_s1 = inlined_call_operand.vmem [shape: f32[32,224], index: 1, kind: input, shape index: {}]   ;;  %s515_s2 = inlined_call_operand.vmem [shape: f32[1,224], index: 2, kind: input, shape index: {}]   ;;  %s516_s3 = inlined_call_operand.vmem [shape: f32[128,96], index: 3, kind: input, shape index: {}]   ;;  %s517_s4 = inlined_call_operand.hbm [shape: f32[16,96], index: 4, kind: output, shape index: {}]  }
   0x1   :  { %v21_v0 = vld [vmem:[%s514_s1 + $0x8] sm:$0xff]  ;;  %v23_v1 = vld [vmem:[%s514_s1 + $0x18] sm:$0xff]  ;;  %v20_v2 = vld [vmem:[%s514_s1] sm:$0xff]  ;;  %111 = vmatprep.mubr.f32.mxu0 %v386_v7 }
   0x2   :  { %v307_v3 = vpack.c.bf16 %v23_v1, %v21_v0  ;;  %v22_v4 = vld [vmem:[%s514_s1 + $0x10] sm:$0xff]  ;;  %v25_v5 = vld [vmem:[%s514_s1 + $0x28] sm:$0xff]  ;;  %v27_v6 = vld [vmem:[%s514_s1 + $0x38] sm:$0xff] }
   0x3   :  { %v309_v8 = vpack.c.bf16 %v22_v4, %v20_v2  ;;  %v311_v9 = vpack.c.bf16 %v27_v6, %v25_v5  ;;  %v24_v10 = vld [vmem:[%s514_s1 + $0x20] sm:$0xff]  ;;  %v26_v11 = vld [vmem:[%s514_s1 + $0x30] sm:$0xff] }
   0x4   :  { %308 = vmatprep.subr.bf16.mxu0 %v307_v3 }
   0x5   :  { %9 = vsyncpa [#allocation3], 0  ;;  %310 = vmatpush1.bf16.msra.mxu0 %v309_v8  ;;  %v313_v12 = vpack.c.bf16 %v26_v11, %v24_v10  ;;  %v18_v13 = vld [vmem:[%s513_s0] sm:$0xff]  ;;  %vm40_vm0 = vcmask 261120   ;;  %v19_v14 = vld [vmem:[%s513_s0 + $0x8] sm:$0xff]  ;;  %v30_v36 = vlaneseq  ;;  %vm233_vm1 = vcmask 785408  }
   0x6   :  { %312 = vmatprep.subr.bf16.mxu0 %v311_v9  ;;  %v124_v15 = vld [vmem:[%s516_s3] sm:$0xff]  ;;  %v125_v16 = vld [vmem:[%s516_s3 + $0x8] sm:$0xff]  ;;  %v126_v17 = vld [vmem:[%s516_s3 + $0x10] sm:$0xff] }
   0x7   :  { %v315_v18 = vpack.c.bf16 %v125_v16, %v124_v15  ;;  %v127_v19 = vld [vmem:[%s516_s3 + $0x18] sm:$0xff]  ;;  %v128_v21 = vld [vmem:[%s516_s3 + $0x20] sm:$0xff]  ;;  %v129_v22 = vld [vmem:[%s516_s3 + $0x28] sm:$0xff]  ;;  %v31_v37 = vshrl.u32 %v30_v36, 7 }
   0x8   :  { %v319_v20 = vpack.c.bf16 %v127_v19, %v126_v17  ;;  %v323_v23 = vpack.c.bf16 %v129_v22, %v128_v21  ;;  %v130_v24 = vld [vmem:[%s516_s3 + $0x30] sm:$0xff]  ;;  %v131_v25 = vld [vmem:[%s516_s3 + $0x38] sm:$0xff]  ;;  %v132_v27 = vld [vmem:[%s516_s3 + $0x40] sm:$0xff] }
   0x9   :  { %314 = vmatpush1.bf16.msra.mxu0 %v313_v12  ;;  %316 = vmatprep.subr.bf16.mxu1 %v315_v18  ;;  %v327_v26 = vpack.c.bf16 %v131_v25, %v130_v24  ;;  %v133_v28 = vld [vmem:[%s516_s3 + $0x48] sm:$0xff]  ;;  %v134_v30 = vld [vmem:[%s516_s3 + $0x50] sm:$0xff]  ;;  %v135_v31 = vld [vmem:[%s516_s3 + $0x58] sm:$0xff]  ;;  %v32_v38 = vsub.s32 0, %v31_v37  ;;  %v36_v42 = vsub.s32 1, %v31_v37 }
   0xa   :  { %318 = vmatpush3.bf16.msra.mxu1 %v315_v18  ;;  %v331_v29 = vpack.c.bf16 %v133_v28, %v132_v27  ;;  %v335_v32 = vpack.c.bf16 %v135_v31, %v134_v30  ;;  %v136_v33 = vld [vmem:[%s516_s3 + $0x60] sm:$0xff]  ;;  %v137_v34 = vld [vmem:[%s516_s3 + $0x68] sm:$0xff]  ;;  %v138_v39 = vld [vmem:[%s516_s3 + $0x70] sm:$0xff] }
   0xb   :  { %320 = vmatprep.subr.bf16.mxu1 %v319_v20  ;;  %v339_v35 = vpack.c.bf16 %v137_v34, %v136_v33  ;;  %v139_v40 = vld [vmem:[%s516_s3 + $0x78] sm:$0xff]  ;;  %v28_v41 = vld [vmem:[%s515_s2] sm:$0x3]  ;;  %s387_s3 = smov 32   ;;  %s388_s2 = smov [#allocation2]  }
   0xc   :  { %252 = vmatmul.mubr.msk.f32.vlgmr.msra.gmra.mrb[0].mxu0 %vm40_vm0, %v18_v13  ;;  %v343_v43 = vpack.c.bf16 %v139_v40, %v138_v39  ;;  %v33_v44 = vrot.slane %v28_v41, %v32_v38  ;;  %v37_v45 = vrot.slane %v28_v41, %v36_v42  ;;  %s241_s14 = sshll.u32 %s388_s2, 4  ;;  %s242_s14 = int_to_ptr.vmem [resolvable:$true] %s241_s14 }
   0xd   :  { %117 = vmatprep.mubr.f32.mxu0 %v386_v7  ;;  %s362_s15 = scalar_lea.vmem %s242_s14, 256  ;;  %p367_p1 = scmp.lt.s32.totalorder %s242_s14, %s242_s14 }
   0xe   :  { %322 = vmatpush3.bf16.msra.mxu1 %v319_v20  ;;  %p363_p0 = scmp.ne.s32.totalorder %s242_s14, %s362_s15  ;;  %p368_p2 = scmp.lt.s32.totalorder %s362_s15, %s362_s15 }
   0xf   :  { %324 = vmatprep.subr.bf16.mxu1 %v323_v23 }
  0x10   :  { %253 = vmatmul.mubr.msk.f32.gmra.mrb[2].mxu0 %vm40_vm0, %v19_v14  ;;  %p369_p3 = por %p368_p2, %p367_p1 }
  0x12   :  { %326 = vmatpush3.bf16.msra.mxu1 %v323_v23  ;;  %p370_p4 = pnand %p369_p3, %p363_p0 }
  0x13   :  { %328 = vmatprep.subr.bf16.mxu1 %v327_v26 }
  0x16   :  { %330 = vmatpush3.bf16.msra.mxu1 %v327_v26 }
  0x17   :  { %332 = vmatprep.subr.bf16.mxu1 %v331_v29 }
  0x1a   :  { %334 = vmatpush3.bf16.msra.mxu1 %v331_v29 }
  0x1b   :  { %336 = vmatprep.subr.bf16.mxu1 %v335_v32 }
  0x1e   :  { %338 = vmatpush3.bf16.msra.mxu1 %v335_v32 }
  0x1f   :  { %340 = vmatprep.subr.bf16.mxu1 %v339_v35 }
  0x22   :  { %342 = vmatpush3.bf16.msra.mxu1 %v339_v35 }
  0x23   :  { %344 = vmatprep.subr.bf16.mxu1 %v343_v43 }
  0x26   :  { %346 = vmatpush3.bf16.msra.mxu1 %v343_v43 }
  0xdf   :  { %v113_v46 = vpop.f32.mrb[0].mxu0 }
  0xe0   :  { %v114_v47 = vadd.f32 %v113_v46, %v33_v44  ;;  %v115_v48 = vpop.f32.mrb[1].mxu0 }
  0xe1   :  { %v116_v49 = vadd.f32 %v115_v48, %v37_v45 }
  0xe3   :  { %v119_v50 = vpop.f32.mrb[2].mxu0  ;;  %v352_v51 = vpack.i.bf16 %v116_v49, %v114_v47 }
  0xe4   :  { %v120_v52 = vadd.f32 %v119_v50, %v33_v44  ;;  %v121_v53 = vpop.f32.mrb[3].mxu0 }
  0xe5   :  { %v122_v54 = vadd.f32 %v121_v53, %v37_v45  ;;  %353 = vrot.lane.b32.xlu0 %v352_v51, %s387_s3 }
  0xe7   :  { %v357_v55 = vpack.i.bf16 %v122_v54, %v120_v52 }
  0xe9   :  { %358 = vrot.lane.b32.xlu0 %v357_v55, %s387_s3 }
 0x157   :  { %v354_v56 = vpop.permute.xlu0 %353 }
 0x158   :  { %v356_v57 = vunpack.i.h.bf16 %v354_v56  ;;  %v355_v58 = vunpack.i.l.bf16 %v354_v56 }
 0x15a   :  { %v152_v59 = vsel %vm40_vm0, %v355_v58, %v356_v57 }
 0x15b   :  { %v359_v60 = vpop.permute.xlu0 %358  ;;  %304 = vmatprep.mubr.f32.mxu1 %v152_v59 }
 0x15c   :  { %v361_v61 = vunpack.i.h.bf16 %v359_v60  ;;  %v360_v62 = vunpack.i.l.bf16 %v359_v60 }
 0x15e   :  { %v153_v63 = vsel %vm40_vm0, %v360_v62, %v361_v61 }
 0x15f   :  { %305 = vmatmul.mubr.f32.vlgmr.msra.gmra.mrb[0].mxu1 %v153_v63 }
 0x232   :  { %v306_v0 = vpop.f32.mrb[0].mxu1 }
 0x233   :  { %v232_v1 = vadd.f32 %v306_v0, %v120_v52  ;;  %v222_v2 = vpop.f32.mrb[1].mxu1 }
 0x234   :  { %v231_v3 = vadd.f32 %v222_v2, %v114_v47 }
 0x235   :  { %235 = vst.msk [vmem:[#allocation2 + $0x8] sm:$0xff] %vm233_vm1, %v232_v1 }
 0x236   :  { %234 = vst.msk [vmem:[#allocation2] sm:$0xff] %vm233_vm1, %v231_v3 }
 0x237   :  { %373 = shalt.err (!%p370_p4)
}
 0x238   :  { %s374_s17 = scalar_lea.hbm %s517_s4, 256 }
 0x239   :  { %p375_p5 = scmp.ne.s32.totalorder %s517_s4, %s374_s17  ;;  %p378_p6 = scmp.lt.u32.totalorder %s374_s17, %s517_s4 }
 0x23b   :  { %p380_p7 = pnand %p378_p6, %p375_p5 }
 0x23d   :  { %383 = shalt.err (!%p380_p7)
}
 0x23e   :  { %s389_s22 = smov 128   ;;  %s390_s23 = smov 8  }
 0x23f   :  { %247 = dma.vmem_to_hbm [thread:$0]  %s242_s14, 256, %s517_s4, [#allocation3], %s389_s22, %s389_s22, %s390_s23  }
 0x240   :  { %384 = dma.done.wait [#allocation3], 256  }
 0x241   :  { %385 = vsyncadd [#allocation3], 4294967040 }
 0x242   :  { %251 = vsyncpa [#allocation3], 1 }

</bundles_post_ra>
